<compile_context>
chip_gen: v7x
topology: tpu7x:2x2x1
jax: 0.10.0
libtpu: 0.0.40
codegen_flags: <defaults>
</compile_context>

<pallas_src>
import jax
import jax.numpy as jnp
from jax.experimental import pallas as pl
from jax.experimental.pallas import tpu as pltpu

# Module hyper-parameters (defaults of STL.__init__)
TOKEN_NUM = 4                        # number of style tokens
TOKEN_EMB = 256                      # token_embedding_size (= num_units)
NUM_HEADS = 8
REF_GRU = 128                        # ref_enc_gru_size (= query_dim d_q)
HEAD_DIM = TOKEN_EMB // NUM_HEADS    # 32 (= key_dim d_k)
SCORE_W = NUM_HEADS * TOKEN_NUM      # 32 score lanes: lane = head*4 + token
PRED_PAD = 128                       # pred logits padded to a lane-dense width
OUT_W = TOKEN_EMB + PRED_PAD         # 384: [style | padded pred] output slab


def stl_kernel(x_ref, wqk_ref, sgrp_ref, vbd_ref, wvp_ref, pb_ref, out_ref):
    """Whole STL forward for one row-block resident in VMEM.

    x_ref    : [R, 128]   query rows (T_q == 1 squeezed away)
    wqk_ref  : [128, 32]  W_query^T @ Kbd (scale folded in)           (f32)
    sgrp_ref : [32, 32]   block-diagonal ones (head-group sum matrix) (f32)
    vbd_ref  : [32, 256]  block-diagonal values                       (f32)
    wvp_ref  : [32, 128]  Vbd @ padded proj.weight^T                  (f32)
    pb_ref   : [1, 128]   proj.bias, zero-padded                      (f32)
    out_ref  : [R, 384]   [style (256) | padded pred logits (128)]
    """
    x = x_ref[...]                                                    # [R, 128]

    # All-head attention scores in ONE small matmul (W_query and 1/sqrt(d_k)
    # already folded into Wqk).  Lane layout: head*4 + token.
    s = jnp.dot(x, wqk_ref[...], preferred_element_type=jnp.float32)  # [R, 32]

    # Numerically stable per-head softmax over each 4-lane token group.
    # Subtracting the row-wide max (a constant within every group) is exact
    # for the per-group softmax and avoids sub-lane group reductions.
    s = s - jnp.max(s, axis=-1, keepdims=True)
    e = jnp.exp(s)                                                    # EUP
    denom = jnp.dot(e, sgrp_ref[...],
                    preferred_element_type=jnp.float32)               # [R, 32]
    denom = jnp.maximum(denom, 1e-30)     # guard: fully-underflowed group -> p=0, never NaN
    r = pl.reciprocal(denom, approx=True)                             # EUP slot
    r = r * (2.0 - denom * r)             # one Newton step -> ~f32 accurate
    p = e * r                                                         # [R, 32]

    # Weighted sum over tokens for all heads at once: [R,32] @ [32,256].
    style = jnp.dot(p, vbd_ref[...], preferred_element_type=jnp.float32)   # [R, 256]
    # Token logits straight from the probabilities (proj folded into values).
    pred = jnp.dot(p, wvp_ref[...], preferred_element_type=jnp.float32) \
        + pb_ref[...]                                                      # [R, 128]

    # Single fused, lane-dense output slab (two aligned unmasked stores).
    out_ref[:, :TOKEN_EMB] = style.astype(out_ref.dtype)
    out_ref[:, TOKEN_EMB:] = pred.astype(out_ref.dtype)


def prepare_params(embed, wq_t, wk_t, wv_t, projw_t, projb):
    """One-time (parameter-load-time) preprocessing.

    * tanh(embed) and the K/V projections are input independent -> precompute
      k_all / v_all and pack them into block-diagonal Kbd / Vbd.
    * Fold 1/sqrt(d_k) and W_query into the keys:  Wqk = W_query^T @ Kbd.
    * Fold the final projection into the values:   Wvp = Vbd @ proj_pad.
    * Zero-pad the proj bias to a lane-dense 128-wide logits slab.
    All returned matrices are tiny, so they stay in f32 (exact folds).
    """
    f32 = jnp.float32
    keys = jnp.tanh(embed.astype(f32))                       # [4, 32]
    k_all = keys @ wk_t.astype(f32)                          # [4, 256]
    v_all = keys @ wv_t.astype(f32)                          # [4, 256]
    scale = 1.0 / (float(HEAD_DIM) ** 0.5)

    kbd = jnp.zeros((TOKEN_EMB, SCORE_W), f32)               # [256, 32]
    vbd = jnp.zeros((SCORE_W, TOKEN_EMB), f32)               # [32, 256]
    for h in range(NUM_HEADS):
        kh = k_all[:, h * HEAD_DIM:(h + 1) * HEAD_DIM]       # [4, 32]
        vh = v_all[:, h * HEAD_DIM:(h + 1) * HEAD_DIM]       # [4, 32]
        kbd = kbd.at[h * HEAD_DIM:(h + 1) * HEAD_DIM,
                     h * TOKEN_NUM:(h + 1) * TOKEN_NUM].set(kh.T * scale)
        vbd = vbd.at[h * TOKEN_NUM:(h + 1) * TOKEN_NUM,
                     h * HEAD_DIM:(h + 1) * HEAD_DIM].set(vh)

    # Head-group sum matrix: S[i, j] = 1 iff i//4 == j//4.
    sgrp = jnp.kron(jnp.eye(NUM_HEADS, dtype=f32),
                    jnp.ones((TOKEN_NUM, TOKEN_NUM), f32))   # [32, 32]

    pw_pad = jnp.zeros((TOKEN_EMB, PRED_PAD), f32).at[:, :TOKEN_NUM].set(
        projw_t.astype(f32))
    pb_pad = jnp.zeros((1, PRED_PAD), f32).at[:, :TOKEN_NUM].set(
        projb.astype(f32))

    wqk = wq_t.astype(f32) @ kbd                             # [128, 32]
    wvp = vbd @ pw_pad                                       # [32, 128]
    return wqk, sgrp, vbd, wvp, pb_pad


def stl_forward(inputs, params, *, row_block=None, out_dtype=jnp.float32):
    """inputs: [N, 128] -> (style_embed [N, 1, 256], pred_style [N, 1, 4]).

    `params` is the tuple from prepare_params().  row_block defaults to
    min(N, 512): large batches split into multiple parallel grid steps
    (sharded across TensorCores on v7x); tiny batches use one block.
    Set out_dtype=jnp.bfloat16 to halve output writeback if the consumer
    tolerates bf16.
    """
    wqk, sgrp, vbd, wvp, pb = params
    N = inputs.shape[0]
    if row_block is None:
        row_block = N if N <= 512 else 512
    row_block = min(row_block, N)
    assert N % row_block == 0, "row_block must divide the batch"
    if row_block != N:
        assert row_block % 8 == 0, "partial row blocks must be sublane aligned"
    grid = (N // row_block,)

    def row_spec(ncols):
        return pl.BlockSpec((row_block, ncols), lambda i: (i, 0))

    def full_spec(shape):
        return pl.BlockSpec(shape, lambda i: (0, 0))

    weight_bytes = 4 * (wqk.size + sgrp.size + vbd.size + wvp.size + pb.size)
    cost = pl.CostEstimate(
        flops=2 * N * (REF_GRU * SCORE_W + SCORE_W * SCORE_W
                       + SCORE_W * TOKEN_EMB + SCORE_W * PRED_PAD),
        transcendentals=2 * N * SCORE_W,            # exp + reciprocal per lane
        bytes_accessed=(N * REF_GRU * 4 + weight_bytes
                        + N * OUT_W * jnp.dtype(out_dtype).itemsize))

    out = pl.pallas_call(
        stl_kernel,
        out_shape=jax.ShapeDtypeStruct((N, OUT_W), out_dtype),
        grid=grid,
        in_specs=[
            row_spec(REF_GRU),
            full_spec(wqk.shape),
            full_spec(sgrp.shape),
            full_spec(vbd.shape),
            full_spec(wvp.shape),
            full_spec(pb.shape),
        ],
        out_specs=row_spec(OUT_W),
        compiler_params=pltpu.CompilerParams(
            dimension_semantics=("parallel",)),
        cost_estimate=cost,
    )(inputs, wqk, sgrp, vbd, wvp, pb)

    # restore the PyTorch [N, T_q=1, C] convention; drop logit padding lanes
    style = out[:, None, :TOKEN_EMB]
    pred = out[:, None, TOKEN_EMB:TOKEN_EMB + TOKEN_NUM]
    return style, pred


def stl_reference(inputs, embed, wq_t, wk_t, wv_t, projw_t, projb):
    """Pure-JAX reference mirroring the PyTorch module (all f32)."""
    f32 = jnp.float32
    N = inputs.shape[0]
    query = inputs.astype(f32)[:, None, :]                            # [N, 1, 128]
    keys = jnp.broadcast_to(jnp.tanh(embed.astype(f32))[None],
                            (N, TOKEN_NUM, HEAD_DIM))

    q = query @ wq_t.astype(f32)                                      # [N, 1, 256]
    k = keys @ wk_t.astype(f32)                                       # [N, 4, 256]
    v = keys @ wv_t.astype(f32)                                       # [N, 4, 256]

    def split_heads(t):   # [N, T, 256] -> [H, N, T, 32]
        return jnp.stack(jnp.split(t, NUM_HEADS, axis=2), axis=0)

    qh, kh, vh = split_heads(q), split_heads(k), split_heads(v)
    scores = qh @ jnp.swapaxes(kh, 2, 3) / (HEAD_DIM ** 0.5)          # [H, N, 1, 4]
    scores = jax.nn.softmax(scores, axis=3)
    out = scores @ vh                                                 # [H, N, 1, 32]
    style = jnp.concatenate(jnp.split(out, NUM_HEADS, axis=0), axis=3)[0]
    pred = style @ projw_t.astype(f32) + projb.astype(f32)[None]
    return style, pred


if __name__ == "__main__":
    key = jax.random.PRNGKey(0)
    k_in, k_emb, k_q, k_k, k_v, k_pw, k_pb = jax.random.split(key, 7)

    # deterministic synthetic parameters (shapes from STL.__init__)
    embed = 0.5 * jax.random.normal(k_emb, (TOKEN_NUM, HEAD_DIM), jnp.float32)
    # Linear weights stored pre-transposed: [in_features, out_features]
    wq_t = 0.05 * jax.random.normal(k_q, (REF_GRU, TOKEN_EMB), jnp.float32)
    wk_t = 0.05 * jax.random.normal(k_k, (HEAD_DIM, TOKEN_EMB), jnp.float32)
    wv_t = 0.05 * jax.random.normal(k_v, (HEAD_DIM, TOKEN_EMB), jnp.float32)
    projw_t = 0.05 * jax.random.normal(k_pw, (TOKEN_EMB, TOKEN_NUM), jnp.float32)
    projb = 0.01 * jax.random.normal(k_pb, (1, TOKEN_NUM), jnp.float32)

    params = prepare_params(embed, wq_t, wk_t, wv_t, projw_t, projb)
    fwd = jax.jit(stl_forward, static_argnames=("row_block", "out_dtype"))

    # --- small-batch case (single grid step) ----------------------------------
    N = 2
    inputs = jax.random.normal(k_in, (N, REF_GRU), jnp.float32)
    style, pred = fwd(inputs, params)
    jax.block_until_ready((style, pred))

    style_ref, pred_ref = stl_reference(inputs, embed, wq_t, wk_t, wv_t,
                                        projw_t, projb)
    assert style.shape == (N, 1, TOKEN_EMB) and pred.shape == (N, 1, TOKEN_NUM)
    assert jnp.allclose(style[:, 0], style_ref[:, 0], atol=1e-4, rtol=1e-4)
    assert jnp.allclose(pred[:, 0], pred_ref[:, 0], atol=1e-4, rtol=1e-4)

    # --- batched case (multi-step parallel grid, exercises row tiling) --------
    Nb = 64
    inputs_b = jax.random.normal(k_in, (Nb, REF_GRU), jnp.float32)
    style_b, pred_b = fwd(inputs_b, params, row_block=16)
    jax.block_until_ready((style_b, pred_b))
    style_bref, pred_bref = stl_reference(inputs_b, embed, wq_t, wk_t, wv_t,
                                          projw_t, projb)
    assert jnp.allclose(style_b[:, 0], style_bref[:, 0], atol=1e-4, rtol=1e-4)
    assert jnp.allclose(pred_b[:, 0], pred_bref[:, 0], atol=1e-4, rtol=1e-4)

    print("KERNEL_OK")
</pallas_src>

<mosaic_0001>
module attributes {stable_mosaic.version = 11 : i64} {
  func.func @stl_kernel(%arg0: i32, %arg1: memref<2x128xf32, #tpu.memory_space<vmem>>, %arg2: memref<128x32xf32, #tpu.memory_space<vmem>>, %arg3: memref<32x32xf32, #tpu.memory_space<vmem>>, %arg4: memref<32x256xf32, #tpu.memory_space<vmem>>, %arg5: memref<32x128xf32, #tpu.memory_space<vmem>>, %arg6: memref<1x128xf32, #tpu.memory_space<vmem>>, %arg7: memref<2x384xf32, #tpu.memory_space<vmem>>) attributes {dimension_semantics = [#tpu.dimension_semantics<parallel>], iteration_bounds = array<i64: 1>, scalar_prefetch = 0 : i64, scratch_operands = 0 : i64, tpu.core_type = #tpu.core_type<tc>, window_params = [{transform_indices = @transform_0, window_bounds = array<i64: 2, 128>}, {pipeline_mode = #tpu.pipeline_mode<synchronous>, transform_indices = @transform_1, window_bounds = array<i64: 128, 32>}, {pipeline_mode = #tpu.pipeline_mode<synchronous>, transform_indices = @transform_2, window_bounds = array<i64: 32, 32>}, {pipeline_mode = #tpu.pipeline_mode<synchronous>, transform_indices = @transform_3, window_bounds = array<i64: 32, 256>}, {pipeline_mode = #tpu.pipeline_mode<synchronous>, transform_indices = @transform_4, window_bounds = array<i64: 32, 128>}, {pipeline_mode = #tpu.pipeline_mode<synchronous>, transform_indices = @transform_5, window_bounds = array<i64: 1, 128>}, {transform_indices = @transform_6, window_bounds = array<i64: 2, 384>}]} {
    %c0 = arith.constant 0 : index
    %c0_0 = arith.constant 0 : index
    %0 = vector.load %arg1[%c0, %c0_0] : memref<2x128xf32, #tpu.memory_space<vmem>>, vector<2x128xf32>
    %c0_1 = arith.constant 0 : index
    %c0_2 = arith.constant 0 : index
    %1 = vector.load %arg2[%c0_1, %c0_2] : memref<128x32xf32, #tpu.memory_space<vmem>>, vector<128x32xf32>
    %cst = arith.constant dense<0.000000e+00> : vector<2x32xf32>
    %2 = tpu.matmul %0, %1, %cst {dimension_numbers = #tpu.dot_dimension_numbers<[1], [0], [0], [1], [0, 0, 1, 1], [], []>} : vector<2x128xf32>, vector<128x32xf32>, vector<2x32xf32> -> vector<2x32xf32>
    %cst_3 = arith.constant dense<0xFF800000> : vector<2xf32>
    %3 = vector.multi_reduction <maximumf>, %2, %cst_3 [1] : vector<2x32xf32> to vector<2xf32>
    %4 = vector.shape_cast %3 : vector<2xf32> to vector<2x1xf32>
    %5 = vector.broadcast %4 : vector<2x1xf32> to vector<2x32xf32>
    %6 = arith.subf %2, %5 : vector<2x32xf32>
    %7 = math.exp %6 : vector<2x32xf32>
    %c0_4 = arith.constant 0 : index
    %c0_5 = arith.constant 0 : index
    %8 = vector.load %arg3[%c0_4, %c0_5] : memref<32x32xf32, #tpu.memory_space<vmem>>, vector<32x32xf32>
    %cst_6 = arith.constant dense<0.000000e+00> : vector<2x32xf32>
    %9 = tpu.matmul %7, %8, %cst_6 {dimension_numbers = #tpu.dot_dimension_numbers<[1], [0], [0], [1], [0, 0, 1, 1], [], []>} : vector<2x32xf32>, vector<32x32xf32>, vector<2x32xf32> -> vector<2x32xf32>
    %cst_7 = arith.constant 1.000000e-30 : f32
    %10 = vector.broadcast %cst_7 : f32 to vector<2x32xf32>
    %11 = arith.maximumf %9, %10 : vector<2x32xf32>
    %12 = tpu.reciprocal %11 {approx = true} : vector<2x32xf32> -> vector<2x32xf32>
    %13 = arith.mulf %11, %12 : vector<2x32xf32>
    %cst_8 = arith.constant 2.000000e+00 : f32
    %14 = vector.broadcast %cst_8 : f32 to vector<2x32xf32>
    %15 = arith.subf %14, %13 : vector<2x32xf32>
    %16 = arith.mulf %12, %15 : vector<2x32xf32>
    %17 = arith.mulf %7, %16 : vector<2x32xf32>
    %c0_9 = arith.constant 0 : index
    %c0_10 = arith.constant 0 : index
    %18 = vector.load %arg4[%c0_9, %c0_10] : memref<32x256xf32, #tpu.memory_space<vmem>>, vector<32x256xf32>
    %cst_11 = arith.constant dense<0.000000e+00> : vector<2x256xf32>
    %19 = tpu.matmul %17, %18, %cst_11 {dimension_numbers = #tpu.dot_dimension_numbers<[1], [0], [0], [1], [0, 0, 1, 1], [], []>} : vector<2x32xf32>, vector<32x256xf32>, vector<2x256xf32> -> vector<2x256xf32>
    %c0_12 = arith.constant 0 : index
    %c0_13 = arith.constant 0 : index
    %20 = vector.load %arg5[%c0_12, %c0_13] : memref<32x128xf32, #tpu.memory_space<vmem>>, vector<32x128xf32>
    %cst_14 = arith.constant dense<0.000000e+00> : vector<2x128xf32>
    %21 = tpu.matmul %17, %20, %cst_14 {dimension_numbers = #tpu.dot_dimension_numbers<[1], [0], [0], [1], [0, 0, 1, 1], [], []>} : vector<2x32xf32>, vector<32x128xf32>, vector<2x128xf32> -> vector<2x128xf32>
    %c0_15 = arith.constant 0 : index
    %c0_16 = arith.constant 0 : index
    %22 = vector.load %arg6[%c0_15, %c0_16] : memref<1x128xf32, #tpu.memory_space<vmem>>, vector<1x128xf32>
    %23 = vector.broadcast %22 : vector<1x128xf32> to vector<2x128xf32>
    %24 = arith.addf %21, %23 : vector<2x128xf32>
    %c0_17 = arith.constant 0 : index
    %c0_18 = arith.constant 0 : index
    %25 = vector.load %arg7[%c0_17, %c0_18] : memref<2x384xf32, #tpu.memory_space<vmem>>, vector<2x256xf32>
    tpu.vector_store %arg7[%c0_17, %c0_18], %19 {strides = array<i32>} : memref<2x384xf32, #tpu.memory_space<vmem>>, vector<2x256xf32>,
    %c0_19 = arith.constant 0 : index
    %c256 = arith.constant 256 : index
    %26 = vector.load %arg7[%c0_19, %c256] : memref<2x384xf32, #tpu.memory_space<vmem>>, vector<2x128xf32>
    tpu.vector_store %arg7[%c0_19, %c256], %24 {strides = array<i32>} : memref<2x384xf32, #tpu.memory_space<vmem>>, vector<2x128xf32>,
    return
  }
  func.func @transform_0(%arg0: i32) -> (i32, i32) {
    %c0_i32 = arith.constant 0 : i32
    %c0_i32_0 = arith.constant 0 : i32
    return %arg0, %c0_i32 : i32, i32
  }
  func.func @transform_1(%arg0: i32) -> (i32, i32) {
    %c0_i32 = arith.constant 0 : i32
    %c0_i32_0 = arith.constant 0 : i32
    %c0_i32_1 = arith.constant 0 : i32
    return %c0_i32, %c0_i32_0 : i32, i32
  }
  func.func @transform_2(%arg0: i32) -> (i32, i32) {
    %c0_i32 = arith.constant 0 : i32
    %c0_i32_0 = arith.constant 0 : i32
    %c0_i32_1 = arith.constant 0 : i32
    return %c0_i32, %c0_i32_0 : i32, i32
  }
  func.func @transform_3(%arg0: i32) -> (i32, i32) {
    %c0_i32 = arith.constant 0 : i32
    %c0_i32_0 = arith.constant 0 : i32
    %c0_i32_1 = arith.constant 0 : i32
    return %c0_i32, %c0_i32_0 : i32, i32
  }
  func.func @transform_4(%arg0: i32) -> (i32, i32) {
    %c0_i32 = arith.constant 0 : i32
    %c0_i32_0 = arith.constant 0 : i32
    %c0_i32_1 = arith.constant 0 : i32
    return %c0_i32, %c0_i32_0 : i32, i32
  }
  func.func @transform_5(%arg0: i32) -> (i32, i32) {
    %c0_i32 = arith.constant 0 : i32
    %c0_i32_0 = arith.constant 0 : i32
    %c0_i32_1 = arith.constant 0 : i32
    return %c0_i32, %c0_i32_0 : i32, i32
  }
  func.func @transform_6(%arg0: i32) -> (i32, i32) {
    %c0_i32 = arith.constant 0 : i32
    %c0_i32_0 = arith.constant 0 : i32
    return %arg0, %c0_i32 : i32, i32
  }
}

</mosaic_0001>

<bundles_post_ra>
// kernel: stl_forward.1
= control target key start
LH: loop header
LB: loop body
LE: loop exit
PB: predicated region body
PF: predicated region fallthrough
CT: control target
= control target key end

     0   :  { %v521_v0 = vmov 0.0|0.0   ;;  %vm522_vm0 = vmmov 0   ;;  %v523_v4 = vmov 0.0   ;;  %vm110_vm1 = vcmask 254976   ;;  %s689_s1 = inlined_call_operand.vmem [shape: f32[128,32], index: 1, kind: input, shape index: {}]   ;;  %s690_s0 = inlined_call_operand.vmem [shape: f32[2,128], index: 0, kind: input, shape index: {}]   ;;  %s691_s2 = inlined_call_operand.vmem [shape: f32[32,32], index: 2, kind: input, shape index: {}]   ;;  %s692_s3 = inlined_call_operand.vmem [shape: f32[32,256], index: 3, kind: input, shape index: {}]   ;;  %s693_s4 = inlined_call_operand.vmem [shape: f32[32,128], index: 4, kind: input, shape index: {}]   ;;  %s694_s6 = inlined_call_operand.vmem [shape: f32[2,384], index: 6, kind: output, shape index: {}]   ;;  %s695_s5 = inlined_call_operand.vmem [shape: f32[1,128], index: 5, kind: input, shape index: {}]  }
   0x1   :  { %470 = vmatprep.subr.bf16.mxu0 %v521_v0  ;;  %v24_v1 = vld [vmem:[%s689_s1] sm:$0xff]  ;;  %v25_v2 = vld [vmem:[%s689_s1 + $0x8] sm:$0xff]  ;;  %v26_v3 = vld [vmem:[%s689_s1 + $0x10] sm:$0xff]  ;;  %445 = vmatprep.mubr.msk.f32.mxu0 %vm522_vm0, %v523_v4  ;;  %vm121_vm2 = vcmask 261120  }
   0x2   :  { %v471_v5 = vpack.c.bf16 %v25_v2, %v24_v1  ;;  %v27_v6 = vld [vmem:[%s689_s1 + $0x18] sm:$0xff]  ;;  %494 = vmatprep.subr.bf16.mxu1 %v521_v0  ;;  %456 = vmatprep.mubr.msk.f32.mxu1 %vm522_vm0, %v523_v4  ;;  %v28_v8 = vld [vmem:[%s689_s1 + $0x20] sm:$0xff]  ;;  %v29_v9 = vld [vmem:[%s689_s1 + $0x28] sm:$0xff] }
   0x3   :  { %v474_v7 = vpack.c.bf16 %v27_v6, %v26_v3  ;;  %v477_v10 = vpack.c.bf16 %v29_v9, %v28_v8  ;;  %v30_v11 = vld [vmem:[%s689_s1 + $0x30] sm:$0xff]  ;;  %v31_v12 = vld [vmem:[%s689_s1 + $0x38] sm:$0xff]  ;;  %v32_v14 = vld [vmem:[%s689_s1 + $0x40] sm:$0xff] }
   0x4   :  { %472 = vmatpush3.bf16.msra.mxu0 %v471_v5  ;;  %v480_v13 = vpack.c.bf16 %v31_v12, %v30_v11  ;;  %v33_v15 = vld [vmem:[%s689_s1 + $0x48] sm:$0xff]  ;;  %v34_v17 = vld [vmem:[%s689_s1 + $0x50] sm:$0xff]  ;;  %v35_v18 = vld [vmem:[%s689_s1 + $0x58] sm:$0xff] }
   0x5   :  { %473 = vmatprep.subr.bf16.mxu0 %v521_v0  ;;  %v483_v16 = vpack.c.bf16 %v33_v15, %v32_v14  ;;  %v486_v19 = vpack.c.bf16 %v35_v18, %v34_v17  ;;  %v36_v20 = vld [vmem:[%s689_s1 + $0x60] sm:$0xff]  ;;  %v37_v21 = vld [vmem:[%s689_s1 + $0x68] sm:$0xff]  ;;  %v38_v23 = vld [vmem:[%s689_s1 + $0x70] sm:$0xff] }
   0x6   :  { %v489_v22 = vpack.c.bf16 %v37_v21, %v36_v20  ;;  %v39_v24 = vld [vmem:[%s689_s1 + $0x78] sm:$0xff]  ;;  %v23_v26 = vld [vmem:[%s690_s0] sm:$0x3]  ;;  %v118_v31 = vld [vmem:[%s691_s2 + $0x8] sm:$0xff] }
   0x7   :  { %v492_v25 = vpack.c.bf16 %v39_v24, %v38_v23  ;;  %v117_v30 = vld [vmem:[%s691_s2] sm:$0xff]  ;;  %v119_v32 = vld [vmem:[%s691_s2 + $0x10] sm:$0xff]  ;;  %v120_v34 = vld [vmem:[%s691_s2 + $0x18] sm:$0xff] }
   0x8   :  { %475 = vmatpush3.bf16.msra.mxu0 %v474_v7  ;;  %v495_v33 = vpack.c.bf16 %v118_v31, %v117_v30  ;;  %v498_v35 = vpack.c.bf16 %v120_v34, %v119_v32  ;;  %v202_v40 = vld [vmem:[%s692_s3 + $0x8] sm:$0xff]  ;;  %v204_v41 = vld [vmem:[%s692_s3 + $0x18] sm:$0xff]  ;;  %v201_v43 = vld [vmem:[%s692_s3] sm:$0xff] }
   0x9   :  { %476 = vmatprep.subr.bf16.mxu0 %v521_v0  ;;  %v500_v42 = vpack.c.bf16 %v204_v41, %v202_v40  ;;  %v203_v44 = vld [vmem:[%s692_s3 + $0x10] sm:$0xff]  ;;  %v206_v46 = vld [vmem:[%s692_s3 + $0x28] sm:$0xff]  ;;  %v208_v47 = vld [vmem:[%s692_s3 + $0x38] sm:$0xff] }
   0xa   :  { %496 = vmatpush3.bf16.msra.mxu1 %v495_v33  ;;  %v502_v45 = vpack.c.bf16 %v203_v44, %v201_v43  ;;  %v504_v48 = vpack.c.bf16 %v208_v47, %v206_v46  ;;  %v205_v49 = vld [vmem:[%s692_s3 + $0x20] sm:$0xff]  ;;  %v207_v50 = vld [vmem:[%s692_s3 + $0x30] sm:$0xff]  ;;  %v284_v59 = vld [vmem:[%s693_s4 + $0x8] sm:$0xff] }
   0xb   :  { %497 = vmatprep.subr.bf16.mxu1 %v521_v0  ;;  %v506_v51 = vpack.c.bf16 %v207_v50, %v205_v49  ;;  %v283_v58 = vld [vmem:[%s693_s4] sm:$0xff]  ;;  %v285_v63 = vld [vmem:[%s693_s4 + $0x10] sm:$0xff]  ;;  %v286_v1 = vld [vmem:[%s693_s4 + $0x18] sm:$0xff] }
   0xc   :  { %478 = vmatpush3.bf16.msra.mxu0 %v477_v10  ;;  %v509_v61 = vpack.c.bf16 %v284_v59, %v283_v58  ;;  %v512_v2 = vpack.c.bf16 %v286_v1, %v285_v63  ;;  %v383_v7 = vld [vmem:[%s695_s5] ss:$0 sm:$0xff] }
   0xd   :  { %479 = vmatprep.subr.bf16.mxu0 %v521_v0 }
   0xe   :  { %499 = vmatpush3.bf16.msra.mxu1 %v498_v35 }
   0xf   :  { %501 = vmatprep.subr.bf16.mxu1 %v500_v42 }
  0x10   :  { %481 = vmatpush3.bf16.msra.mxu0 %v480_v13 }
  0x11   :  { %482 = vmatprep.subr.bf16.mxu0 %v521_v0 }
  0x14   :  { %484 = vmatpush3.bf16.msra.mxu0 %v483_v16 }
  0x15   :  { %485 = vmatprep.subr.bf16.mxu0 %v521_v0 }
  0x18   :  { %487 = vmatpush3.bf16.msra.mxu0 %v486_v19 }
  0x19   :  { %488 = vmatprep.subr.bf16.mxu0 %v521_v0 }
  0x1c   :  { %490 = vmatpush3.bf16.msra.mxu0 %v489_v22 }
  0x1d   :  { %491 = vmatprep.subr.bf16.mxu0 %v521_v0 }
  0x20   :  { %493 = vmatpush3.bf16.msra.mxu0 %v492_v25 }
  0x23   :  { %446 = vmatmul.mubr.f32.vlgmr.msra.gmra.mrb[0].mxu0 %v23_v26 }
  0xf6   :  { %v106_v27 = vpop.f32.mrb[0].mxu0 }
  0xf7   :  { %v447_v28 = vpop.f32.mrb[1].mxu0  ;;  %v111_v29 = vsel %vm110_vm1, %v106_v27, -inf }
  0xf8   :  { %112 = vmax.xlane.f32.xlu0 %v111_v29 }
 0x185   :  { %v113_v36 = vpop.xlane.xlu0 %112 }
 0x186   :  { %v114_v37 = vsub.f32 %v106_v27, %v113_v36 }
 0x188   :  { %v115_v38 = vmul.f32 1.442695, %v114_v37 }
 0x18a   :  { %517 = vpow2.f32 %v115_v38 }
 0x194   :  { %v518_v39 = vpop.eup %517 }
 0x195   :  { %457 = vmatmul.mubr.msk.f32.vlgmr.msra.gmra.mrb[0].mxu1 %vm121_vm2, %v518_v39 }
 0x196   :  { %276 = vmatprep.mubr.f32.mxu1 %v523_v4  ;;  %503 = vmatpush1.bf16.msra.mxu1 %v502_v45 }
 0x197   :  { %505 = vmatprep.subr.bf16.mxu1 %v504_v48 }
 0x19a   :  { %507 = vmatpush1.bf16.msra.mxu1 %v506_v51 }
 0x19b   :  { %508 = vmatprep.subr.bf16.mxu1 %v521_v0 }
 0x268   :  { %v191_v52 = vpop.f32.mrb[0].mxu1 }
 0x269   :  { %v195_v53 = vmax.f32 %v191_v52, 1e-30  ;;  %v458_v54 = vpop.f32.mrb[1].mxu1 }
 0x26b   :  { %519 = vrcp.f32 %v195_v53 }
 0x275   :  { %v520_v55 = vpop.eup %519 }
 0x276   :  { %v197_v56 = vmul.f32 %v520_v55, %v195_v53 }
 0x278   :  { %v198_v57 = vsub.f32 2.0, %v197_v56 }
 0x27a   :  { %v199_v60 = vmul.f32 %v520_v55, %v198_v57 }
 0x27c   :  { %v200_v62 = vmul.f32 %v518_v39, %v199_v60 }
 0x27e   :  { %382 = vmatmul.mubr.msk.f32.vlgmr.msra.gmra.mrb[2].mxu1 %vm121_vm2, %v200_v62 }
 0x27f   :  { %510 = vmatpush3.bf16.msra.mxu1 %v509_v61  ;;  %467 = vmatprep.mubr.msk.f32.mxu1 %vm522_vm0, %v523_v4 }
 0x280   :  { %511 = vmatprep.subr.bf16.mxu1 %v521_v0 }
 0x283   :  { %513 = vmatpush3.bf16.msra.mxu1 %v512_v2 }
 0x286   :  { %468 = vmatmul.mubr.msk.f32.vlgmr.msra.gmra.mrb[4].mxu1 %vm121_vm2, %v200_v62 }
 0x351   :  { %v278_v3 = vpop.f32.mrb[2].mxu1 }
 0x352   :  { %v280_v5 = vpop.f32.mrb[3].mxu1 }
 0x353   :  { %v366_v6 = vcombine.low %v278_v3, %v280_v5 }
 0x355   :  { %385 = vst.sshfl [vmem:[%s694_s6] sm:$0x33 pattern:$0x76325410] %v366_v6 }
 0x359   :  { %v360_v8 = vpop.f32.mrb[4].mxu1 }
 0x35a   :  { %v361_v9 = vadd.f32 %v383_v7, %v360_v8  ;;  %v469_v10 = vpop.f32.mrb[5].mxu1 }
 0x35c   :  { %376 = vst [vmem:[%s694_s6 + $0x4] sm:$0x3] %v361_v9 }

</bundles_post_ra>
